<compile_context>
chip_gen: v5e
topology: v5e:2x2
jax: 0.10.0
libtpu: 0.0.40
codegen_flags: <defaults>
</compile_context>

<pallas_src>
import jax
import jax.numpy as jnp
from jax.experimental import pallas as pl
from jax.experimental.pallas import tpu as pltpu


def qnet_kernel(x_ref, w1_ref, b1_ref, w2_ref, b2_ref, w3_ref, b3_ref, o_ref):
    # x arrives in f32 (no wrapper-side pad/cast); cast to the MXU compute
    # dtype right at the dot input. f32 accumulation, f32 epilogue.
    # NOTE: the last batch tile may be ragged; the garbage rows Pallas reads
    # for that tile flow through the matmuls strictly row-locally and land only
    # in output rows that are never written back. Do NOT add any cross-row
    # reduction inside this kernel.
    x = x_ref[...].astype(w1_ref.dtype)
    # fc1 + ReLU
    h1 = jnp.dot(x, w1_ref[...], preferred_element_type=jnp.float32)
    h1 = jnp.maximum(h1 + b1_ref[...], 0.0)
    # fc2 + ReLU
    h2 = jnp.dot(h1.astype(w2_ref.dtype), w2_ref[...],
                 preferred_element_type=jnp.float32)
    h2 = jnp.maximum(h2 + b2_ref[...], 0.0)
    # fc3 (output columns padded to 128 lanes -> lane-dense, unmasked vst)
    out = jnp.dot(h2.astype(w3_ref.dtype), w3_ref[...],
                  preferred_element_type=jnp.float32)
    o_ref[...] = (out + b3_ref[...]).astype(o_ref.dtype)


def _round_up(a, m):
    return (a + m - 1) // m * m


def prepare_params(params, *, compute_dtype=jnp.bfloat16):
    """One-time preprocessing of the f32 master params into kernel layout.

    Call once at init (or after each optimizer step), NOT per forward:
    casting w1/w2 to the compute dtype and zero-padding fc3 to a 128-wide
    lane-dense output here removes ~5 small XLA ops + their HBM round trips
    from every forward call of a microsecond-scale kernel.
    """
    cd = compute_dtype
    w3 = params["w3"]
    out_size = w3.shape[1]
    out_pad = _round_up(out_size, 128)
    w3p = jnp.zeros((w3.shape[0], out_pad), cd).at[:, :out_size].set(w3.astype(cd))
    b3p = jnp.zeros((1, out_pad), jnp.float32).at[:, :out_size].set(
        params["b3"].astype(jnp.float32))
    return {
        "w1": params["w1"].astype(cd), "b1": params["b1"].astype(jnp.float32),
        "w2": params["w2"].astype(cd), "b2": params["b2"].astype(jnp.float32),
        "w3": w3p, "b3": b3p,
        "out_size": out_size,  # python int; sliced off in the wrapper
    }


def qnetwork_forward(x, prepared, *, block_b=None, out_dtype=jnp.float32):
    """x: (B, input_size) float32; prepared: output of prepare_params()."""
    w1, b1 = prepared["w1"], prepared["b1"]
    w2, b2 = prepared["w2"], prepared["b2"]
    w3, b3 = prepared["w3"], prepared["b3"]
    out_size = prepared["out_size"]

    B, in_size = x.shape
    h1_size, h2_size = w1.shape[1], w2.shape[1]
    out_pad = w3.shape[1]

    # Batch tiling: 16-row aligned (bf16 packs 16 sublanes/vreg), at least two
    # grid steps when the batch permits (so the "parallel" axis shards across
    # v7x's 2 TensorCores), capped at 1024 rows/tile to amortize the ~0.35 us
    # per-grid-step overhead. VMEM at TB=1024 is only a few MiB -> well under
    # 64 MiB (v7x) and 128 MiB (v5e/v6e). Ragged last tile handled by Pallas.
    if block_b is None:
        block_b = min(1024, max(16, _round_up(pl.cdiv(B, 2), 16)))
    block_b = max(16, _round_up(block_b, 16))
    grid_b = pl.cdiv(B, block_b)

    cd_itemsize = jnp.dtype(w1.dtype).itemsize
    flops = 2 * B * (in_size * h1_size + h1_size * h2_size + h2_size * out_pad)
    bytes_accessed = (
        B * in_size * jnp.dtype(x.dtype).itemsize                 # x (f32 in)
        + (in_size * h1_size + h1_size * h2_size
           + h2_size * out_pad) * cd_itemsize                     # weights
        + (h1_size + h2_size + out_pad) * 4                       # biases (f32)
        + B * out_pad * jnp.dtype(out_dtype).itemsize)            # output

    def tile_spec(feat):
        # x / out tiles march over the batch axis with the grid index.
        return pl.BlockSpec((block_b, feat), lambda i: (i, 0))

    def resident_spec(shape):
        # Constant block index -> weights/biases DMA'd once and VMEM-resident
        # across the whole batch loop. (pl.Buffered(1) would also drop the
        # unused second ~113 KiB buffer; left at the default for portability.)
        return pl.BlockSpec(shape, lambda i: (0, 0))

    out_padded = pl.pallas_call(
        qnet_kernel,
        out_shape=jax.ShapeDtypeStruct((B, out_pad), out_dtype),
        grid_spec=pltpu.PrefetchScalarGridSpec(
            num_scalar_prefetch=0,
            grid=(grid_b,),
            in_specs=[
                tile_spec(in_size),
                resident_spec(w1.shape), resident_spec(b1.shape),
                resident_spec(w2.shape), resident_spec(b2.shape),
                resident_spec(w3.shape), resident_spec(b3.shape),
            ],
            out_specs=tile_spec(out_pad),
        ),
        compiler_params=pltpu.CompilerParams(
            # batch axis is independent -> shards across v7x's 2 TCs,
            # harmless on v5e/v6e (single TC).
            dimension_semantics=("parallel",),
            # explicit scoped-VMEM budget; safe for v7x's 64 MiB physical VMEM
            vmem_limit_bytes=32 * 1024 * 1024,
        ),
        cost_estimate=pl.CostEstimate(
            flops=flops, transcendentals=0, bytes_accessed=bytes_accessed),
    )(x, w1, b1, w2, b2, w3, b3)

    return out_padded[:, :out_size]


def init_params(key, input_size, output_size):
    """Deterministic synthetic init (uniform +/- 1/sqrt(fan_in), like nn.Linear)."""
    sizes = [(input_size, 256), (256, 128), (128, output_size)]
    params = {}
    keys = jax.random.split(key, 2 * len(sizes))
    for i, (fan_in, fan_out) in enumerate(sizes):
        bound = 1.0 / jnp.sqrt(fan_in)
        params[f"w{i+1}"] = jax.random.uniform(
            keys[2 * i], (fan_in, fan_out), jnp.float32, -bound, bound)
        params[f"b{i+1}"] = jax.random.uniform(
            keys[2 * i + 1], (1, fan_out), jnp.float32, -bound, bound)
    return params


def _reference_forward(x, params, cd):
    """Pure-JAX reference with the same mixed-precision recipe as the kernel."""
    h = jnp.dot(x.astype(cd), params["w1"].astype(cd),
                preferred_element_type=jnp.float32) + params["b1"]
    h = jnp.maximum(h, 0.0)
    h = jnp.dot(h.astype(cd), params["w2"].astype(cd),
                preferred_element_type=jnp.float32) + params["b2"]
    h = jnp.maximum(h, 0.0)
    return jnp.dot(h.astype(cd), params["w3"].astype(cd),
                   preferred_element_type=jnp.float32) + params["b3"]


if __name__ == "__main__":
    input_size = 32   # state vector size
    output_size = 8   # number of actions
    batch = 2

    key = jax.random.PRNGKey(0)
    k_params, k_x = jax.random.split(key)
    params = init_params(k_params, input_size, output_size)
    prepared = prepare_params(params)                 # once, not per forward
    x = jax.random.normal(k_x, (batch, input_size), dtype=jnp.float32)

    q_values = qnetwork_forward(x, prepared)
    q_values = jax.block_until_ready(q_values)
    assert q_values.shape == (batch, output_size)

    # sanity check vs. pure-JAX reference using the same bf16-matmul recipe
    ref_bf16 = _reference_forward(x, params, jnp.bfloat16)
    assert jnp.allclose(q_values, ref_bf16, atol=1e-2, rtol=1e-2)

    # and loosely vs. the full-f32 reference (bf16 matmul rounding only)
    h = jnp.maximum(x @ params["w1"] + params["b1"], 0.0)
    h = jnp.maximum(h @ params["w2"] + params["b2"], 0.0)
    ref_f32 = h @ params["w3"] + params["b3"]
    assert jnp.allclose(q_values, ref_f32, atol=5e-2, rtol=5e-2)

    # TODO(synk): QNetwork.save()/load() are host-side checkpoint I/O, not kernel work.
    print("KERNEL_OK")
</pallas_src>

<mosaic_0001>
module attributes {stable_mosaic.version = 11 : i64} {
  func.func @qnet_kernel(%arg0: i32, %arg1: memref<16x32xf32, #tpu.memory_space<vmem>>, %arg2: memref<32x256xbf16, #tpu.memory_space<vmem>>, %arg3: memref<1x256xf32, #tpu.memory_space<vmem>>, %arg4: memref<256x128xbf16, #tpu.memory_space<vmem>>, %arg5: memref<1x128xf32, #tpu.memory_space<vmem>>, %arg6: memref<128x128xbf16, #tpu.memory_space<vmem>>, %arg7: memref<1x128xf32, #tpu.memory_space<vmem>>, %arg8: memref<16x128xf32, #tpu.memory_space<vmem>>) attributes {dimension_semantics = [#tpu.dimension_semantics<parallel>], iteration_bounds = array<i64: 1>, scalar_prefetch = 0 : i64, scratch_operands = 0 : i64, tpu.core_type = #tpu.core_type<tc>, window_params = [{transform_indices = @transform_0, window_bounds = array<i64: 16, 32>}, {pipeline_mode = #tpu.pipeline_mode<synchronous>, transform_indices = @transform_1, window_bounds = array<i64: 32, 256>}, {pipeline_mode = #tpu.pipeline_mode<synchronous>, transform_indices = @transform_2, window_bounds = array<i64: 1, 256>}, {pipeline_mode = #tpu.pipeline_mode<synchronous>, transform_indices = @transform_3, window_bounds = array<i64: 256, 128>}, {pipeline_mode = #tpu.pipeline_mode<synchronous>, transform_indices = @transform_4, window_bounds = array<i64: 1, 128>}, {pipeline_mode = #tpu.pipeline_mode<synchronous>, transform_indices = @transform_5, window_bounds = array<i64: 128, 128>}, {pipeline_mode = #tpu.pipeline_mode<synchronous>, transform_indices = @transform_6, window_bounds = array<i64: 1, 128>}, {transform_indices = @transform_7, window_bounds = array<i64: 16, 128>}]} {
    %c0 = arith.constant 0 : index
    %c0_0 = arith.constant 0 : index
    %0 = vector.load %arg1[%c0, %c0_0] : memref<16x32xf32, #tpu.memory_space<vmem>>, vector<16x32xf32>
    %1 = arith.truncf %0 : vector<16x32xf32> to vector<16x32xbf16>
    %c0_1 = arith.constant 0 : index
    %c0_2 = arith.constant 0 : index
    %2 = vector.load %arg2[%c0_1, %c0_2] : memref<32x256xbf16, #tpu.memory_space<vmem>>, vector<32x256xbf16>
    %cst = arith.constant dense<0.000000e+00> : vector<16x256xf32>
    %3 = tpu.matmul %1, %2, %cst {dimension_numbers = #tpu.dot_dimension_numbers<[1], [0], [0], [1], [0, 0, 1, 1], [], []>} : vector<16x32xbf16>, vector<32x256xbf16>, vector<16x256xf32> -> vector<16x256xf32>
    %c0_3 = arith.constant 0 : index
    %c0_4 = arith.constant 0 : index
    %4 = vector.load %arg3[%c0_3, %c0_4] : memref<1x256xf32, #tpu.memory_space<vmem>>, vector<1x256xf32>
    %5 = vector.broadcast %4 : vector<1x256xf32> to vector<16x256xf32>
    %6 = arith.addf %3, %5 : vector<16x256xf32>
    %cst_5 = arith.constant 0.000000e+00 : f32
    %7 = vector.broadcast %cst_5 : f32 to vector<16x256xf32>
    %8 = arith.maximumf %6, %7 : vector<16x256xf32>
    %9 = arith.truncf %8 : vector<16x256xf32> to vector<16x256xbf16>
    %c0_6 = arith.constant 0 : index
    %c0_7 = arith.constant 0 : index
    %10 = vector.load %arg4[%c0_6, %c0_7] : memref<256x128xbf16, #tpu.memory_space<vmem>>, vector<256x128xbf16>
    %cst_8 = arith.constant dense<0.000000e+00> : vector<16x128xf32>
    %11 = tpu.matmul %9, %10, %cst_8 {dimension_numbers = #tpu.dot_dimension_numbers<[1], [0], [0], [1], [0, 0, 1, 1], [], []>} : vector<16x256xbf16>, vector<256x128xbf16>, vector<16x128xf32> -> vector<16x128xf32>
    %c0_9 = arith.constant 0 : index
    %c0_10 = arith.constant 0 : index
    %12 = vector.load %arg5[%c0_9, %c0_10] : memref<1x128xf32, #tpu.memory_space<vmem>>, vector<1x128xf32>
    %13 = vector.broadcast %12 : vector<1x128xf32> to vector<16x128xf32>
    %14 = arith.addf %11, %13 : vector<16x128xf32>
    %cst_11 = arith.constant 0.000000e+00 : f32
    %15 = vector.broadcast %cst_11 : f32 to vector<16x128xf32>
    %16 = arith.maximumf %14, %15 : vector<16x128xf32>
    %17 = arith.truncf %16 : vector<16x128xf32> to vector<16x128xbf16>
    %c0_12 = arith.constant 0 : index
    %c0_13 = arith.constant 0 : index
    %18 = vector.load %arg6[%c0_12, %c0_13] : memref<128x128xbf16, #tpu.memory_space<vmem>>, vector<128x128xbf16>
    %cst_14 = arith.constant dense<0.000000e+00> : vector<16x128xf32>
    %19 = tpu.matmul %17, %18, %cst_14 {dimension_numbers = #tpu.dot_dimension_numbers<[1], [0], [0], [1], [0, 0, 1, 1], [], []>} : vector<16x128xbf16>, vector<128x128xbf16>, vector<16x128xf32> -> vector<16x128xf32>
    %c0_15 = arith.constant 0 : index
    %c0_16 = arith.constant 0 : index
    %20 = vector.load %arg7[%c0_15, %c0_16] : memref<1x128xf32, #tpu.memory_space<vmem>>, vector<1x128xf32>
    %21 = vector.broadcast %20 : vector<1x128xf32> to vector<16x128xf32>
    %22 = arith.addf %19, %21 : vector<16x128xf32>
    %c0_17 = arith.constant 0 : index
    %c0_18 = arith.constant 0 : index
    %23 = vector.load %arg8[%c0_17, %c0_18] : memref<16x128xf32, #tpu.memory_space<vmem>>, vector<16x128xf32>
    tpu.vector_store %arg8[%c0_17, %c0_18], %22 {strides = array<i32>} : memref<16x128xf32, #tpu.memory_space<vmem>>, vector<16x128xf32>,
    return
  }
  func.func @transform_0(%arg0: i32) -> (i32, i32) {
    %c0_i32 = arith.constant 0 : i32
    %c0_i32_0 = arith.constant 0 : i32
    return %arg0, %c0_i32 : i32, i32
  }
  func.func @transform_1(%arg0: i32) -> (i32, i32) {
    %c0_i32 = arith.constant 0 : i32
    %c0_i32_0 = arith.constant 0 : i32
    %c0_i32_1 = arith.constant 0 : i32
    return %c0_i32, %c0_i32_0 : i32, i32
  }
  func.func @transform_2(%arg0: i32) -> (i32, i32) {
    %c0_i32 = arith.constant 0 : i32
    %c0_i32_0 = arith.constant 0 : i32
    %c0_i32_1 = arith.constant 0 : i32
    return %c0_i32, %c0_i32_0 : i32, i32
  }
  func.func @transform_3(%arg0: i32) -> (i32, i32) {
    %c0_i32 = arith.constant 0 : i32
    %c0_i32_0 = arith.constant 0 : i32
    %c0_i32_1 = arith.constant 0 : i32
    return %c0_i32, %c0_i32_0 : i32, i32
  }
  func.func @transform_4(%arg0: i32) -> (i32, i32) {
    %c0_i32 = arith.constant 0 : i32
    %c0_i32_0 = arith.constant 0 : i32
    %c0_i32_1 = arith.constant 0 : i32
    return %c0_i32, %c0_i32_0 : i32, i32
  }
  func.func @transform_5(%arg0: i32) -> (i32, i32) {
    %c0_i32 = arith.constant 0 : i32
    %c0_i32_0 = arith.constant 0 : i32
    %c0_i32_1 = arith.constant 0 : i32
    return %c0_i32, %c0_i32_0 : i32, i32
  }
  func.func @transform_6(%arg0: i32) -> (i32, i32) {
    %c0_i32 = arith.constant 0 : i32
    %c0_i32_0 = arith.constant 0 : i32
    %c0_i32_1 = arith.constant 0 : i32
    return %c0_i32, %c0_i32_0 : i32, i32
  }
  func.func @transform_7(%arg0: i32) -> (i32, i32) {
    %c0_i32 = arith.constant 0 : i32
    %c0_i32_0 = arith.constant 0 : i32
    return %arg0, %c0_i32 : i32, i32
  }
}

</mosaic_0001>

<bundles_post_ra>
// kernel: tpu_custom_call.1
= control target key start
LH: loop header
LB: loop body
LE: loop exit
PB: predicated region body
PF: predicated region fallthrough
CT: control target
= control target key end

     0   :  { %12 = vsyncpa [#allocation3], 0  ;;  %s833_s0 = inlined_call_operand.hbm [shape: f32[2,32], index: 0, kind: input, shape index: {}]   ;;  %s834_s1 = inlined_call_operand.hbm [shape: bf16[32,256], index: 1, kind: input, shape index: {}]   ;;  %s835_s2 = inlined_call_operand.hbm [shape: f32[1,256], index: 2, kind: input, shape index: {}]   ;;  %s836_s3 = inlined_call_operand.hbm [shape: bf16[256,128], index: 3, kind: input, shape index: {}]   ;;  %s837_s4 = inlined_call_operand.vmem [shape: f32[1,128], index: 4, kind: input, shape index: {}]   ;;  %s838_s5 = inlined_call_operand.hbm [shape: bf16[128,128], index: 5, kind: input, shape index: {}]   ;;  %s839_s6 = inlined_call_operand.vmem [shape: f32[1,128], index: 6, kind: input, shape index: {}]   ;;  %s840_s7 = inlined_call_operand.hbm [shape: f32[2,128], index: 7, kind: output, shape index: {}]  }
   0x1   :  { %13 = vsyncpa [#allocation6], 0 }
   0x2   :  { %14 = vsyncpa [#allocation9], 0 }
   0x3   :  { %15 = vsyncpa [#allocation4], 0  ;;  %s33_s26 = sshll.u32 %s834_s1, 4  ;;  %s34_s26 = int_to_ptr.hbm [resolvable:$true] %s33_s26 }
   0x4   :  { %19 = vsyncadd [#allocation3], 224  ;;  %s751_s27 = smov [#allocation5]   ;;  %s57_s8 = sshll.u32 %s836_s3, 4  ;;  %s58_s8 = int_to_ptr.hbm [resolvable:$true] %s57_s8 }
   0x5   :  { %s35_s28 = sshll.u32 %s751_s27, 4  ;;  %s752_s9 = smov 128   ;;  %s36_s28 = int_to_ptr.vmem [resolvable:$true] %s35_s28 }
   0x6   :  { %s753_s10 = smov 8   ;;  %s754_s11 = smov [#allocation8]  }
   0x7   :  { %41 = dma.hbm_to_vmem [thread:$0]  %s34_s26, 512, %s36_s28, [#allocation6], %s752_s9, %s752_s9, %s753_s10  }
   0x8   :  { %s59_s12 = sshll.u32 %s754_s11, 4  ;;  %s755_s13 = smov 64   ;;  %s60_s12 = int_to_ptr.vmem [resolvable:$true] %s59_s12 }
   0x9   :  { %s756_s14 = smov 4   ;;  %s20_s16 = sshll.u32 %s833_s0, 4  ;;  %s21_s16 = int_to_ptr.hbm [resolvable:$true] %s20_s16 }
   0xa   :  { %65 = dma.hbm_to_vmem [thread:$0]  %s58_s8, 2048, %s60_s12, [#allocation9], %s755_s13, %s755_s13, %s756_s14  }
   0xb   :  { %s757_s17 = smov [#allocation2]   ;;  %s47_s20 = sshll.u32 %s835_s2, 4  ;;  %s48_s20 = int_to_ptr.hbm [resolvable:$true] %s47_s20 }
   0xc   :  { %s22_s18 = sshll.u32 %s757_s17, 4  ;;  %s758_s21 = smov 32   ;;  %s23_s18 = int_to_ptr.vmem [resolvable:$true] %s22_s18 }
   0xd   :  { %s759_s22 = smov 2   ;;  %s760_s23 = smov [#allocation7]  }
   0xe   :  { %28 = dma.hbm_to_vmem [thread:$0]  %s21_s16, 32, %s23_s18, [#allocation3], %s758_s21, %s758_s21, %s759_s22  }
   0xf   :  { %s49_s24 = sshll.u32 %s760_s23, 4  ;;  %s72_s0 = sshll.u32 %s838_s5, 4  ;;  %s50_s24 = int_to_ptr.vmem [resolvable:$true] %s49_s24  ;;  %s73_s0 = int_to_ptr.hbm [resolvable:$true] %s72_s0 }
  0x10   :  { %52 = dma.hbm_to_vmem [thread:$0]  %s48_s20, 32, %s50_s24, [#allocation6]  }
  0x11   :  { %s761_s27 = smov [#allocation10]  }
  0x12   :  { %s74_s28 = sshll.u32 %s761_s27, 4  ;;  %s75_s28 = int_to_ptr.vmem [resolvable:$true] %s74_s28 }
  0x13   :  { %80 = dma.hbm_to_vmem [thread:$0]  %s73_s0, 1024, %s75_s28, [#allocation9], %s755_s13, %s755_s13, %s756_s14  }
  0x14   :  { %743 = dma.done.wait [#allocation3], 256  }
  0x15   :  { %744 = vsyncadd [#allocation3], 4294967040 }
  0x16   :  { %745 = dma.done.wait [#allocation6], 544  }
  0x17   :  { %746 = vsyncadd [#allocation6], 4294966752 }
  0x18   :  { %747 = dma.done.wait [#allocation9], 3072  }
  0x19   :  { %748 = vsyncadd [#allocation9], 4294964224  ;;  %v453_v0 = vld [vmem:[#allocation5 + $0x10] sm:$0xf]  ;;  %v560_v1 = vld [vmem:[#allocation5 + $0x14] sm:$0xf0] }
  0x1a   :  { %v445_v2 = vld [vmem:[#allocation5] sm:$0xf]  ;;  %v454_v3 = vor.u32 %v560_v1, %v453_v0  ;;  %v558_v4 = vld [vmem:[#allocation5 + $0x4] sm:$0xf0]  ;;  %v559_v5 = vld [vmem:[#allocation5 + $0x14] sm:$0xf] }
  0x1b   :  { %v455_v6 = vld [vmem:[#allocation5 + $0x18] sm:$0xf0]  ;;  %v446_v7 = vor.u32 %v558_v4, %v445_v2  ;;  %v104_v8 = vld [vmem:[#allocation2] sm:$0xff]  ;;  %v557_v12 = vld [vmem:[#allocation5 + $0x4] sm:$0xf]  ;;  %vm137_vm0 = vcmask 261120  }
  0x1c   :  { %147 = vmatpush.bf16.msra.mxu1 %v454_v3  ;;  %v105_v9 = vld [vmem:[#allocation2 + $0x8] sm:$0xff]  ;;  %v458_v11 = vor.u32 %v559_v5, %v455_v6  ;;  %v447_v13 = vld [vmem:[#allocation5 + $0x8] sm:$0xf0]  ;;  %v565_v18 = vld [vmem:[#allocation8 + $0x20] sm:$0xff] }
  0x1d   :  { %v568_v10 = vld [vmem:[#allocation8 + $0x38] sm:$0xff]  ;;  %v567_v14 = vld [vmem:[#allocation8 + $0x30] sm:$0xff]  ;;  %v106_v15 = vpack.c.bf16 %v105_v9, %v104_v8  ;;  %v450_v16 = vor.u32 %v557_v12, %v447_v13  ;;  %v566_v17 = vld [vmem:[#allocation8 + $0x28] sm:$0xff] }
  0x1e   :  { %307 = vmatpush.bf16.msra.mxu2 %v568_v10  ;;  %v564_v19 = vld [vmem:[#allocation8 + $0x18] sm:$0xff]  ;;  %v563_v21 = vld [vmem:[#allocation8 + $0x10] sm:$0xff]  ;;  %v562_v23 = vld [vmem:[#allocation8 + $0x8] sm:$0xff] }
  0x1f   :  { %v576_v20 = vld [vmem:[#allocation8 + $0x78] sm:$0xff]  ;;  %v575_v22 = vld [vmem:[#allocation8 + $0x70] sm:$0xff]  ;;  %v574_v24 = vld [vmem:[#allocation8 + $0x68] sm:$0xff] }
  0x20   :  { %148 = vmatpush.bf16.msra.mxu1 %v446_v7  ;;  %321 = vmatpush.bf16.msra.mxu3 %v576_v20  ;;  %v561_v25 = vld [vmem:[#allocation8] sm:$0xff]  ;;  %v572_v27 = vld [vmem:[#allocation8 + $0x58] sm:$0xff]  ;;  %v571_v28 = vld [vmem:[#allocation8 + $0x50] sm:$0xff] }
  0x21   :  { %v573_v26 = vld [vmem:[#allocation8 + $0x60] sm:$0xff]  ;;  %v570_v29 = vld [vmem:[#allocation8 + $0x48] sm:$0xff]  ;;  %v111_v31 = vld [vmem:[#allocation7] sm:$0x3] }
  0x22   :  { %308 = vmatpush.bf16.msra.mxu2 %v567_v14  ;;  %v569_v30 = vld [vmem:[#allocation8 + $0x40] sm:$0xff]  ;;  %v113_v33 = vperm.slane %v111_v31, 0  ;;  %v114_v41 = vperm.slane %v111_v31, 1  ;;  %v584_v48 = vld [vmem:[#allocation10 + $0x38] sm:$0xff]  ;;  %v583_v49 = vld [vmem:[#allocation10 + $0x30] sm:$0xff] }
  0x23   :  { %459 = vmatmul.msk.bf16.vlgmr.msra.gmra.mxu1 %vm137_vm0, %v106_v15  ;;  %406 = vmatpush.bf16.msra.mxu0 %v584_v48  ;;  %v582_v50 = vld [vmem:[#allocation10 + $0x28] sm:$0xff]  ;;  %v581_v51 = vld [vmem:[#allocation10 + $0x20] sm:$0xff]  ;;  %v580_v52 = vld [vmem:[#allocation10 + $0x18] sm:$0xff] }
  0x24   :  { %161 = vmatpush.bf16.msrb.mxu1 %v458_v11  ;;  %322 = vmatpush.bf16.msra.mxu3 %v575_v22  ;;  %v579_v53 = vld [vmem:[#allocation10 + $0x10] sm:$0xff]  ;;  %v578_v54 = vld [vmem:[#allocation10 + $0x8] sm:$0xff]  ;;  %v577_v55 = vld [vmem:[#allocation10] sm:$0xff] }
  0x25   :  { %v597_v58 = vld [vmem:[%s837_s4] ss:$0 sm:$0xff] }
  0x26   :  { %309 = vmatpush.bf16.msra.mxu2 %v566_v17  ;;  %v598_v4 = vld [vmem:[%s839_s6] ss:$0 sm:$0xff] }
  0x27   :  { %407 = vmatpush.bf16.msra.mxu0 %v583_v49 }
  0x28   :  { %162 = vmatpush.bf16.msrb.mxu1 %v450_v16  ;;  %323 = vmatpush.bf16.msra.mxu3 %v574_v24 }
  0x2a   :  { %310 = vmatpush.bf16.msra.mxu2 %v565_v18 }
  0x2b   :  { %408 = vmatpush.bf16.msra.mxu0 %v582_v50 }
  0x2c   :  { %324 = vmatpush.bf16.msra.mxu3 %v573_v26 }
  0x2e   :  { %311 = vmatpush.bf16.msra.mxu2 %v564_v19 }
  0x2f   :  { %409 = vmatpush.bf16.msra.mxu0 %v581_v51 }
  0x30   :  { %325 = vmatpush.bf16.msra.mxu3 %v572_v27 }
  0x32   :  { %312 = vmatpush.bf16.msra.mxu2 %v563_v21 }
  0x33   :  { %460 = vmatmul.msk.bf16.vlgmr.msrb.gmra.mxu1 %vm137_vm0, %v106_v15  ;;  %410 = vmatpush.bf16.msra.mxu0 %v580_v52 }
  0x34   :  { %326 = vmatpush.bf16.msra.mxu3 %v571_v28 }
  0x36   :  { %313 = vmatpush.bf16.msra.mxu2 %v562_v23 }
  0x37   :  { %411 = vmatpush.bf16.msra.mxu0 %v579_v53 }
  0x38   :  { %327 = vmatpush.bf16.msra.mxu3 %v570_v29 }
  0x3a   :  { %314 = vmatpush.bf16.msra.mxu2 %v561_v25 }
  0x3b   :  { %412 = vmatpush.bf16.msra.mxu0 %v578_v54 }
  0x3c   :  { %328 = vmatpush.bf16.msra.mxu3 %v569_v30 }
  0x3f   :  { %413 = vmatpush.bf16.msra.mxu0 %v577_v55 }
  0xa0   :  { %v150_v32 = vpop.f32.mrf.mxu1 }
  0xa1   :  { %v151_v34 = vadd.f32 %v150_v32, %v113_v33 }
  0xa3   :  { %v169_v37 = vmax.f32 %v151_v34, 0.0 }
  0xa8   :  { %v152_v35 = vpop.f32.mrf.mxu1 }
  0xa9   :  { %v153_v36 = vadd.f32 %v152_v35, %v113_v33 }
  0xab   :  { %v171_v38 = vmax.f32 %v153_v36, 0.0 }
  0xad   :  { %v173_v39 = vpack.c.bf16 %v171_v38, %v169_v37 }
  0xaf   :  { %315 = vmatmul.bf16.vlgmr.msra.gmra.mxu2 %v173_v39 }
  0xb0   :  { %v164_v40 = vpop.f32.mrf.mxu1 }
  0xb1   :  { %v165_v42 = vadd.f32 %v164_v40, %v114_v41 }
  0xb3   :  { %v170_v45 = vmax.f32 %v165_v42, 0.0 }
  0xb8   :  { %v166_v43 = vpop.f32.mrf.mxu1 }
  0xb9   :  { %v167_v44 = vadd.f32 %v166_v43, %v114_v41 }
  0xbb   :  { %v172_v46 = vmax.f32 %v167_v44, 0.0 }
  0xbd   :  { %v174_v47 = vpack.c.bf16 %v172_v46, %v170_v45 }
  0xbf   :  { %329 = vmatmul.bf16.vlgmr.msra.gmra.mxu3 %v174_v47 }
 0x132   :  { %v316_v56 = vpop.f32.mrf.mxu2 }
 0x133   :  { %v317_v60 = vadd.f32 %v597_v58, %v316_v56 }
 0x13a   :  { %v318_v59 = vpop.f32.mrf.mxu2 }
 0x13b   :  { %v319_v61 = vadd.f32 %v597_v58, %v318_v59 }
 0x142   :  { %v330_v57 = vpop.f32.mrf.mxu3 }
 0x143   :  { %v331_v62 = vadd.f32 %v330_v57, %v317_v60 }
 0x145   :  { %v335_v1 = vmax.f32 %v331_v62, 0.0 }
 0x14a   :  { %v332_v63 = vpop.f32.mrf.mxu3 }
 0x14b   :  { %v333_v0 = vadd.f32 %v332_v63, %v319_v61 }
 0x14d   :  { %v336_v2 = vmax.f32 %v333_v0, 0.0 }
 0x14f   :  { %v337_v3 = vpack.c.bf16 %v336_v2, %v335_v1 }
 0x151   :  { %414 = vmatmul.bf16.vlgmr.msra.gmra.mxu0 %v337_v3 }
 0x1ce   :  { %v415_v5 = vpop.f32.mrf.mxu0 }
 0x1cf   :  { %v416_v6 = vadd.f32 %v598_v4, %v415_v5 }
 0x1d1   :  { %420 = vst [vmem:[#allocation11] sm:$0xff] %v416_v6 }
 0x1d6   :  { %v417_v7 = vpop.f32.mrf.mxu0 }
 0x1d7   :  { %v418_v8 = vadd.f32 %v598_v4, %v417_v7 }
 0x1d9   :  { %421 = vst [vmem:[#allocation11 + $0x8] sm:$0xff] %v418_v8 }
 0x1da   :  { %425 = vsyncadd [#allocation4], 224  ;;  %s428_s9 = sshll.u32 %s840_s7, 4  ;;  %s762_s10 = smov [#allocation11]   ;;  %s429_s9 = int_to_ptr.hbm [resolvable:$true] %s428_s9 }
 0x1db   :  { %s426_s11 = sshll.u32 %s762_s10, 4  ;;  %s427_s11 = int_to_ptr.vmem [resolvable:$true] %s426_s11 }
 0x1dc   :  { %434 = dma.vmem_to_hbm [thread:$0]  %s427_s11, 32, %s429_s9, [#allocation4], %s758_s21, %s758_s21, %s759_s22  }
 0x1dd   :  { %749 = dma.done.wait [#allocation4], 256  }
 0x1de   :  { %750 = vsyncadd [#allocation4], 4294967040 }
 0x1df   :  { %439 = vsyncpa [#allocation3], 1 }
 0x1e0   :  { %440 = vsyncpa [#allocation6], 1 }
 0x1e1   :  { %441 = vsyncpa [#allocation9], 1 }
 0x1e2   :  { %442 = vsyncpa [#allocation4], 1 }

</bundles_post_ra>
